<compile_context>
chip_gen: v5e
topology: v5e:2x2
jax: 0.10.0
libtpu: 0.0.40
codegen_flags: <defaults>
</compile_context>

<pallas_src>
import functools

import jax
import jax.numpy as jnp
from jax import lax
from jax.experimental import pallas as pl
from jax.experimental.pallas import tpu as pltpu

_LANE = 128
_NEG = -1e30  # "minus infinity" sentinel; exp(_NEG - anything_sane) == 0 in f32


def _round_up(x, m):
    return ((x + m - 1) // m) * m


def _supcon_kernel(featr_ref, featc_ref, clsr_ref, clsc_ref, den_ref, out_ref,
                   m_sc, l_sc, psum_sc, *,
                   tn, slabs_per_tile, cols_resident, loss_scale):
    """One (row-tile i, column-tile j) step of the flash-style SupCon forward.

    featr_ref: [tm, Dp]  anchor-row features, pre-scaled by 1/temperature
    featc_ref: [tn, Dp]  contrast features ([n_pad_c, Dp] when cols_resident)
    clsr_ref:  [tm, 1]   int32 class id per anchor row   (-1 for row padding)
    clsc_ref:  [n_pad_c/128, 128] int32 class id per contrast column (-2 pad)
    den_ref:   [tm, 1]   f32 positive-pair count per anchor (computed in JAX)
    out_ref:   [tm, 1]   per-anchor loss, written on the last column tile
    m_sc/l_sc/psum_sc: [tm, 128] lane-parallel online-LSE / positive-sum state
    """
    i = pl.program_id(0)
    j = pl.program_id(1)
    tm = featr_ref.shape[0]

    @pl.when(j == 0)
    def _init():
        m_sc[...] = jnp.full_like(m_sc, _NEG)
        l_sc[...] = jnp.zeros_like(l_sc)
        psum_sc[...] = jnp.zeros_like(psum_sc)

    if cols_resident:
        c0 = pl.multiple_of(j * tn, _LANE)
        featc = featc_ref[pl.ds(c0, tn), :]
    else:
        featc = featc_ref[...]

    # logits = (feat / temperature) @ feat.T ; contract the trailing dim of
    # both operands so the MXU reads the row-major tiles directly.
    s = lax.dot_general(featr_ref[...], featc,
                        dimension_numbers=(((1,), (1,)), ((), ())),
                        preferred_element_type=jnp.float32)           # [tm, tn]

    row_ids = i * tm + lax.broadcasted_iota(jnp.int32, (tm, 1), 0)     # [tm, 1]
    clsr = clsr_ref[...]                                               # [tm, 1]

    # Lane-parallel online LSE: accumulator lane L owns all contrast columns
    # congruent to L mod 128, so the inner loop is pure per-lane VPU work; the
    # cross-lane merge happens exactly once, in the finalize below.
    # TODO(synk): the self-contrast compare/select could additionally be gated
    # (lax.cond) to the few tiles whose column range intersects the row range.
    for k in range(slabs_per_tile):
        sk = s[:, k * _LANE:(k + 1) * _LANE]                           # [tm,128]
        col_ids = (j * tn + k * _LANE
                   + lax.broadcasted_iota(jnp.int32, (1, _LANE), 1))   # [1, 128]
        clsc = clsc_ref[pl.ds(j * slabs_per_tile + k, 1), :]           # [1, 128]

        nd = row_ids != col_ids                     # exclude self-contrast
        sk = jnp.where(nd, sk, _NEG)                # single mask pass; exp -> 0
        pos = jnp.logical_and(clsr == clsc, nd)     # one-hot Jaccard == equality

        m_prev = m_sc[...]
        m_new = jnp.maximum(m_prev, sk)
        l_sc[...] = l_sc[...] * jnp.exp(m_prev - m_new) + jnp.exp(sk - m_new)
        m_sc[...] = m_new
        psum_sc[...] += jnp.where(pos, sk, 0.0)

    @pl.when(j == pl.num_programs(1) - 1)
    def _finalize():
        # single cross-lane merge per row tile (the only XLU reductions).
        m_lane = m_sc[...]
        m_row = jnp.max(m_lane, axis=1, keepdims=True)                 # [tm, 1]
        l_row = jnp.sum(l_sc[...] * jnp.exp(m_lane - m_row),
                        axis=1, keepdims=True)
        lse = m_row + jnp.log(l_row)                # logsumexp over j != i
        psum = jnp.sum(psum_sc[...], axis=1, keepdims=True)
        # mean_log_prob_pos = sum_pos(s)/count_pos - lse ; loss = -(t/bt)*mlpp
        out_ref[...] = loss_scale * (psum / den_ref[...] - lse)


def supcon_loss(features, labels, *, temperature=0.1, base_temperature=0.1,
                num_classes=8, feature_dtype=jnp.bfloat16, cols_resident=None):
    """SupConLoss forward.  `features` is [bsz, n_views, ...]; `labels` is a
    1-D integer class-id vector of length bsz (the module's one-hot path).
    feature_dtype=bfloat16 by default (f32 MXU accumulation); pass jnp.float32
    for bit-faithful numerics."""
    del num_classes  # class ids are compared directly; no one-hot materialized
    if features.ndim < 3:
        raise ValueError("`features` needs to be [bsz, n_views, ...]")
    if features.ndim > 3:
        features = features.reshape(features.shape[0], features.shape[1], -1)
    bsz, n_views, dim = features.shape
    if labels.ndim != 1:
        # TODO(synk): dense multi-hot 2-D `labels` need the Jaccard mask
        # precomputed in JAX and streamed in tiles; only class-id labels here.
        raise NotImplementedError("Pallas path supports 1-D integer labels")

    n = n_views * bsz
    labels = labels.astype(jnp.int32)
    # contrast_feature = torch.cat(torch.unbind(features, dim=1), dim=0)
    contrast = jnp.transpose(features, (1, 0, 2)).reshape(n, dim)
    contrast = contrast.astype(jnp.float32)
    cls = jnp.tile(labels, (n_views,))                                  # [n]

    # Positive-pair count per anchor (= row sum of the diag-removed equality
    # mask).  Data-independent of the features, so computed once here instead
    # of a per-tile cross-lane reduction in the kernel.  (O(bsz^2) compare is
    # fine for realistic bsz.)
    same = (labels[:, None] == labels[None, :]).astype(jnp.float32)
    den = jnp.tile(n_views * jnp.sum(same, axis=1) - 1.0, (n_views,))   # [n]

    # -------------------- tiling / VMEM budgeting ---------------------------
    fsz = jnp.dtype(feature_dtype).itemsize
    tn = _LANE if n <= _LANE else 256
    n_pad_c = _round_up(n, tn)
    slabs_per_tile = tn // _LANE

    d_pad = _round_up(max(dim, 1), _LANE)
    need_sentinel = n_pad_c > n
    # Padded contrast columns are killed via a sentinel feature column that
    # drives their logits to -1e30 through the MXU (zero in-kernel masking
    # cost); it reuses the existing zero-padding unless dim is lane-aligned.
    d_pad_s = d_pad + (_LANE if (need_sentinel and dim == d_pad) else 0)

    try:
        vmem_cap = int(pltpu.get_tpu_info().vmem_capacity_bytes)
    except Exception:  # pragma: no cover
        vmem_cap = 64 * 1024 * 1024                 # v7x-safe fallback
    budget = (vmem_cap * 11) // 20                  # ~55% of per-core VMEM

    # Keep the whole contrast matrix resident in VMEM when it fits (kills the
    # (n_rows/tm)-fold HBM re-streaming of the column operand).
    if cols_resident is None:
        cols_resident = 2 * n_pad_c * d_pad_s * fsz <= budget // 3
    cols_resident = bool(cols_resident)

    # Row tile: big enough to amortize column streaming / grid-step overhead,
    # but always >=2 row tiles so the "parallel" axis shards across both v7x
    # TensorCores, and shrunk if the per-step footprint would blow VMEM.
    num_row_tiles = max(2, -(-n // 512)) if n > 8 else 1
    tm = max(8, _round_up(-(-n // num_row_tiles), 8))

    def _footprint(tm_):
        rows = 2 * tm_ * d_pad_s * fsz                       # double-buffered
        cols = 2 * (n_pad_c if cols_resident else tn) * d_pad_s * fsz
        small = 6 * tm_ * _LANE * 4 + 2 * n_pad_c * 4        # cls/den/out blocks
        scratch = 3 * tm_ * _LANE * 4
        tmps = 8 * tm_ * tn * 4                              # live [tm,tn] temps
        return rows + cols + small + scratch + tmps + (2 << 20)

    while tm > 8 and _footprint(tm) > budget:
        tm = max(8, _round_up(tm // 2, 8))
    n_pad_r = _round_up(n, tm)
    vmem_limit = int(min(budget, max(2 * _footprint(tm), 24 << 20)))

    # -------------------- padded operands ------------------------------------
    inv_temp = 1.0 / float(temperature)
    feat_rows = jnp.zeros((n_pad_r, d_pad_s), feature_dtype)
    feat_rows = feat_rows.at[:n, :dim].set(
        (contrast * inv_temp).astype(feature_dtype))     # temperature folded in
    feat_cols = jnp.zeros((n_pad_c, d_pad_s), feature_dtype)
    feat_cols = feat_cols.at[:n, :dim].set(contrast.astype(feature_dtype))
    if need_sentinel:
        feat_rows = feat_rows.at[:, dim].set(jnp.asarray(1.0, feature_dtype))
        feat_cols = feat_cols.at[n:, dim].set(jnp.asarray(_NEG, feature_dtype))

    cls_rows = jnp.full((n_pad_r, 1), -1, jnp.int32).at[:n, 0].set(cls)
    cls_cols = (jnp.full((n_pad_c,), -2, jnp.int32).at[:n].set(cls)
                .reshape(n_pad_c // _LANE, _LANE))
    den_rows = jnp.ones((n_pad_r, 1), jnp.float32).at[:n, 0].set(den)

    kernel = functools.partial(
        _supcon_kernel,
        tn=tn, slabs_per_tile=slabs_per_tile, cols_resident=cols_resident,
        loss_scale=float(-(temperature / base_temperature)))

    if cols_resident:
        featc_spec = pl.BlockSpec((n_pad_c, d_pad_s), lambda i, j: (0, 0))
    else:
        featc_spec = pl.BlockSpec((tn, d_pad_s), lambda i, j: (j, 0))

    grid = (n_pad_r // tm, n_pad_c // tn)
    per_anchor = pl.pallas_call(
        kernel,
        out_shape=jax.ShapeDtypeStruct((n_pad_r, 1), jnp.float32),
        grid_spec=pltpu.PrefetchScalarGridSpec(
            num_scalar_prefetch=0,
            grid=grid,
            in_specs=[
                pl.BlockSpec((tm, d_pad_s), lambda i, j: (i, 0)),   # anchor rows
                featc_spec,                                          # contrast cols
                pl.BlockSpec((tm, 1), lambda i, j: (i, 0)),          # row class ids
                pl.BlockSpec((n_pad_c // _LANE, _LANE),
                             lambda i, j: (0, 0)),                   # col class ids
                pl.BlockSpec((tm, 1), lambda i, j: (i, 0)),          # positive count
            ],
            out_specs=pl.BlockSpec((tm, 1), lambda i, j: (i, 0)),
            scratch_shapes=[pltpu.VMEM((tm, _LANE), jnp.float32)] * 3),
        compiler_params=pltpu.CompilerParams(
            dimension_semantics=("parallel", "arbitrary"),
            vmem_limit_bytes=vmem_limit),
    )(feat_rows, feat_cols, cls_rows, cls_cols, den_rows)

    # loss.view(anchor_count, batch_size).mean() == mean over the N real anchors
    return jnp.mean(per_anchor[:n, 0])


def supcon_loss_ref(features, labels, *, temperature=0.1, base_temperature=0.1,
                    num_classes=8):
    """Pure-JAX transliteration of the PyTorch forward (for verification)."""
    if features.ndim > 3:
        features = features.reshape(features.shape[0], features.shape[1], -1)
    bsz, n_views, dim = features.shape
    if labels.ndim == 1:
        labels = jax.nn.one_hot(labels, num_classes, dtype=jnp.float32)
    labels = labels.astype(jnp.float32)
    ones = jnp.ones_like(labels)
    mask = (labels @ labels.T) / (labels @ ones.T + ones @ labels.T - labels @ labels.T)
    mask = jnp.nan_to_num(mask, nan=1.0)
    contrast = jnp.transpose(features, (1, 0, 2)).reshape(n_views * bsz, dim)
    adc = (contrast @ contrast.T) / temperature
    logits = adc - jnp.max(adc, axis=1, keepdims=True)
    mask = jnp.tile(mask, (n_views, n_views))
    logits_mask = 1.0 - jnp.eye(n_views * bsz, dtype=jnp.float32)
    mask = mask * logits_mask
    exp_logits = jnp.exp(logits) * logits_mask
    log_prob = logits - jnp.log(jnp.sum(exp_logits, axis=1, keepdims=True))
    mlpp = jnp.sum(mask * log_prob, axis=1) / jnp.sum(mask, axis=1)
    loss = -(temperature / base_temperature) * mlpp
    return jnp.mean(loss)


if __name__ == "__main__":
    key = jax.random.PRNGKey(0)
    k_small, k_med = jax.random.split(key)

    def make_inputs(k, bsz, n_views, dim, num_classes):
        kf, kl = jax.random.split(k)
        feats = jax.random.normal(kf, (bsz, n_views, dim), dtype=jnp.float32)
        feats = feats / jnp.linalg.norm(feats, axis=-1, keepdims=True)
        lbls = jax.random.randint(kl, (bsz,), 0, num_classes, dtype=jnp.int32)
        return feats, lbls

    # Small shape (bsz=8, n_views=2, dim=32): exercises both column-operand
    # paths (VMEM-resident and HBM-tiled) in f32, plus the bf16 default path.
    feats, labels = make_inputs(k_small, 8, 2, 32, 8)
    ref = supcon_loss_ref(feats, labels)
    for resident in (None, False):
        out = jax.block_until_ready(
            supcon_loss(feats, labels, feature_dtype=jnp.float32,
                        cols_resident=resident))
        assert jnp.allclose(out, ref, rtol=1e-4, atol=1e-5), (resident, out, ref)
    out_bf16 = jax.block_until_ready(supcon_loss(feats, labels))  # bf16 default
    assert jnp.allclose(out_bf16, ref, rtol=5e-2, atol=5e-2), (out_bf16, ref)

    # Medium shape (bsz=80, n_views=4, dim=64): 2 row tiles x 2 column tiles,
    # 2 lane slabs per tile and padded contrast columns -> exercises the
    # cross-tile online-LSE merge and the sentinel-column padding path.
    feats2, labels2 = make_inputs(k_med, 80, 4, 64, 8)
    ref2 = supcon_loss_ref(feats2, labels2)
    for resident in (None, False):
        out2 = jax.block_until_ready(
            supcon_loss(feats2, labels2, feature_dtype=jnp.float32,
                        cols_resident=resident))
        assert jnp.allclose(out2, ref2, rtol=1e-4, atol=1e-5), (resident, out2, ref2)

    print("KERNEL_OK")
</pallas_src>

<mosaic_0001>
module attributes {stable_mosaic.version = 11 : i64} {
  func.func @_supcon_kernel(%arg0: i32, %arg1: i32, %arg2: memref<8x128xf32, #tpu.memory_space<vmem>>, %arg3: memref<128x128xf32, #tpu.memory_space<vmem>>, %arg4: memref<8x1xi32, #tpu.memory_space<vmem>>, %arg5: memref<1x128xi32, #tpu.memory_space<vmem>>, %arg6: memref<8x1xf32, #tpu.memory_space<vmem>>, %arg7: memref<8x1xf32, #tpu.memory_space<vmem>>, %arg8: memref<8x128xf32, #tpu.memory_space<vmem>>, %arg9: memref<8x128xf32, #tpu.memory_space<vmem>>, %arg10: memref<8x128xf32, #tpu.memory_space<vmem>>) attributes {dimension_semantics = [#tpu.dimension_semantics<parallel>, #tpu.dimension_semantics<arbitrary>], iteration_bounds = array<i64: 2, 1>, scalar_prefetch = 0 : i64, scratch_operands = 3 : i64, tpu.core_type = #tpu.core_type<tc>, window_params = [{transform_indices = @transform_0, window_bounds = array<i64: 8, 128>}, {pipeline_mode = #tpu.pipeline_mode<synchronous>, transform_indices = @transform_1, window_bounds = array<i64: 128, 128>}, {transform_indices = @transform_2, window_bounds = array<i64: 8, 1>}, {pipeline_mode = #tpu.pipeline_mode<synchronous>, transform_indices = @transform_3, window_bounds = array<i64: 1, 128>}, {transform_indices = @transform_4, window_bounds = array<i64: 8, 1>}, {transform_indices = @transform_5, window_bounds = array<i64: 8, 1>}]} {
    %c0_i32 = arith.constant 0 : i32
    %0 = arith.cmpi eq, %arg1, %c0_i32 : i32
    %1 = arith.extui %0 : i1 to i32
    %c0_i32_0 = arith.constant 0 : i32
    %2 = arith.cmpi ne, %1, %c0_i32_0 : i32
    scf.if %2 {
      %cst_25 = arith.constant -1.000000e+30 : f32
      %51 = vector.broadcast %cst_25 : f32 to vector<8x128xf32>
      %c0_26 = arith.constant 0 : index
      %c0_27 = arith.constant 0 : index
      %52 = vector.load %arg8[%c0_26, %c0_27] : memref<8x128xf32, #tpu.memory_space<vmem>>, vector<8x128xf32>
      tpu.vector_store %arg8[%c0_26, %c0_27], %51 {strides = array<i32>} : memref<8x128xf32, #tpu.memory_space<vmem>>, vector<8x128xf32>,
      %cst_28 = arith.constant 0.000000e+00 : f32
      %53 = vector.broadcast %cst_28 : f32 to vector<8x128xf32>
      %c0_29 = arith.constant 0 : index
      %c0_30 = arith.constant 0 : index
      %54 = vector.load %arg9[%c0_29, %c0_30] : memref<8x128xf32, #tpu.memory_space<vmem>>, vector<8x128xf32>
      tpu.vector_store %arg9[%c0_29, %c0_30], %53 {strides = array<i32>} : memref<8x128xf32, #tpu.memory_space<vmem>>, vector<8x128xf32>,
      %cst_31 = arith.constant 0.000000e+00 : f32
      %55 = vector.broadcast %cst_31 : f32 to vector<8x128xf32>
      %c0_32 = arith.constant 0 : index
      %c0_33 = arith.constant 0 : index
      %56 = vector.load %arg10[%c0_32, %c0_33] : memref<8x128xf32, #tpu.memory_space<vmem>>, vector<8x128xf32>
      tpu.vector_store %arg10[%c0_32, %c0_33], %55 {strides = array<i32>} : memref<8x128xf32, #tpu.memory_space<vmem>>, vector<8x128xf32>,
    } else {
    }
    %c128_i32 = arith.constant 128 : i32
    %3 = arith.muli %arg1, %c128_i32 : i32
    %4 = tpu.assume_multiple %3, 128 : i32
    %5 = arith.index_cast %4 : i32 to index
    %c0 = arith.constant 0 : index
    %6 = vector.load %arg3[%5, %c0] : memref<128x128xf32, #tpu.memory_space<vmem>>, vector<128x128xf32>
    %c0_1 = arith.constant 0 : index
    %c0_2 = arith.constant 0 : index
    %7 = vector.load %arg2[%c0_1, %c0_2] : memref<8x128xf32, #tpu.memory_space<vmem>>, vector<8x128xf32>
    %cst = arith.constant dense<0.000000e+00> : vector<8x128xf32>
    %8 = tpu.matmul %7, %6, %cst {dimension_numbers = #tpu.dot_dimension_numbers<[1], [1], [0], [0], [0, 0, 1, 0], [], []>} : vector<8x128xf32>, vector<128x128xf32>, vector<8x128xf32> -> vector<8x128xf32>
    %c8_i32 = arith.constant 8 : i32
    %9 = arith.muli %arg0, %c8_i32 : i32
    %10 = tpu.iota {dimensions = array<i32: 0>} : vector<8x1xi32>
    %11 = vector.broadcast %9 : i32 to vector<8x1xi32>
    %12 = arith.addi %11, %10 : vector<8x1xi32>
    %c0_3 = arith.constant 0 : index
    %c0_4 = arith.constant 0 : index
    %13 = vector.load %arg4[%c0_3, %c0_4] : memref<8x1xi32, #tpu.memory_space<vmem>>, vector<8x1xi32>
    %c128_i32_5 = arith.constant 128 : i32
    %14 = arith.muli %arg1, %c128_i32_5 : i32
    %c0_i32_6 = arith.constant 0 : i32
    %15 = arith.addi %14, %c0_i32_6 : i32
    %16 = tpu.iota {dimensions = array<i32: 1>} : vector<1x128xi32>
    %17 = vector.broadcast %15 : i32 to vector<1x128xi32>
    %18 = arith.addi %17, %16 : vector<1x128xi32>
    %c1_i32 = arith.constant 1 : i32
    %19 = arith.muli %arg1, %c1_i32 : i32
    %c0_i32_7 = arith.constant 0 : i32
    %20 = arith.addi %19, %c0_i32_7 : i32
    %21 = arith.index_cast %20 : i32 to index
    %c0_8 = arith.constant 0 : index
    %22 = vector.load %arg5[%21, %c0_8] : memref<1x128xi32, #tpu.memory_space<vmem>>, vector<1x128xi32>
    %23 = vector.broadcast %12 : vector<8x1xi32> to vector<8x128xi32>
    %24 = vector.broadcast %18 : vector<1x128xi32> to vector<8x128xi32>
    %25 = arith.cmpi ne, %23, %24 : vector<8x128xi32>
    %cst_9 = arith.constant -1.000000e+30 : f32
    %26 = vector.broadcast %cst_9 : f32 to vector<8x128xf32>
    %27 = arith.select %25, %8, %26 : vector<8x128xi1>, vector<8x128xf32>
    %28 = vector.broadcast %13 : vector<8x1xi32> to vector<8x128xi32>
    %29 = vector.broadcast %22 : vector<1x128xi32> to vector<8x128xi32>
    %30 = arith.cmpi eq, %28, %29 : vector<8x128xi32>
    %31 = arith.andi %30, %25 : vector<8x128xi1>
    %c0_10 = arith.constant 0 : index
    %c0_11 = arith.constant 0 : index
    %32 = vector.load %arg8[%c0_10, %c0_11] : memref<8x128xf32, #tpu.memory_space<vmem>>, vector<8x128xf32>
    %33 = arith.maximumf %32, %27 : vector<8x128xf32>
    %c0_12 = arith.constant 0 : index
    %c0_13 = arith.constant 0 : index
    %34 = vector.load %arg9[%c0_12, %c0_13] : memref<8x128xf32, #tpu.memory_space<vmem>>, vector<8x128xf32>
    %35 = arith.subf %32, %33 : vector<8x128xf32>
    %36 = math.exp %35 : vector<8x128xf32>
    %37 = arith.mulf %34, %36 : vector<8x128xf32>
    %38 = arith.subf %27, %33 : vector<8x128xf32>
    %39 = math.exp %38 : vector<8x128xf32>
    %40 = arith.addf %37, %39 : vector<8x128xf32>
    %c0_14 = arith.constant 0 : index
    %c0_15 = arith.constant 0 : index
    %41 = vector.load %arg9[%c0_14, %c0_15] : memref<8x128xf32, #tpu.memory_space<vmem>>, vector<8x128xf32>
    tpu.vector_store %arg9[%c0_14, %c0_15], %40 {strides = array<i32>} : memref<8x128xf32, #tpu.memory_space<vmem>>, vector<8x128xf32>,
    %c0_16 = arith.constant 0 : index
    %c0_17 = arith.constant 0 : index
    %42 = vector.load %arg8[%c0_16, %c0_17] : memref<8x128xf32, #tpu.memory_space<vmem>>, vector<8x128xf32>
    tpu.vector_store %arg8[%c0_16, %c0_17], %33 {strides = array<i32>} : memref<8x128xf32, #tpu.memory_space<vmem>>, vector<8x128xf32>,
    %c0_18 = arith.constant 0 : index
    %c0_19 = arith.constant 0 : index
    %43 = vector.load %arg10[%c0_18, %c0_19] : memref<8x128xf32, #tpu.memory_space<vmem>>, vector<8x128xf32>
    %cst_20 = arith.constant 0.000000e+00 : f32
    %44 = vector.broadcast %cst_20 : f32 to vector<8x128xf32>
    %45 = arith.select %31, %27, %44 : vector<8x128xi1>, vector<8x128xf32>
    %46 = arith.addf %43, %45 : vector<8x128xf32>
    %c0_21 = arith.constant 0 : index
    %c0_22 = arith.constant 0 : index
    %47 = vector.load %arg10[%c0_21, %c0_22] : memref<8x128xf32, #tpu.memory_space<vmem>>, vector<8x128xf32>
    tpu.vector_store %arg10[%c0_21, %c0_22], %46 {strides = array<i32>} : memref<8x128xf32, #tpu.memory_space<vmem>>, vector<8x128xf32>,
    %c0_i32_23 = arith.constant 0 : i32
    %48 = arith.cmpi eq, %arg1, %c0_i32_23 : i32
    %49 = arith.extui %48 : i1 to i32
    %c0_i32_24 = arith.constant 0 : i32
    %50 = arith.cmpi ne, %49, %c0_i32_24 : i32
    scf.if %50 {
      %c0_25 = arith.constant 0 : index
      %c0_26 = arith.constant 0 : index
      %51 = vector.load %arg8[%c0_25, %c0_26] : memref<8x128xf32, #tpu.memory_space<vmem>>, vector<8x128xf32>
      %cst_27 = arith.constant dense<0xFF800000> : vector<8xf32>
      %52 = vector.multi_reduction <maximumf>, %51, %cst_27 [1] : vector<8x128xf32> to vector<8xf32>
      %53 = vector.shape_cast %52 : vector<8xf32> to vector<8x1xf32>
      %c0_28 = arith.constant 0 : index
      %c0_29 = arith.constant 0 : index
      %54 = vector.load %arg9[%c0_28, %c0_29] : memref<8x128xf32, #tpu.memory_space<vmem>>, vector<8x128xf32>
      %55 = vector.broadcast %53 : vector<8x1xf32> to vector<8x128xf32>
      %56 = arith.subf %51, %55 : vector<8x128xf32>
      %57 = math.exp %56 : vector<8x128xf32>
      %58 = arith.mulf %54, %57 : vector<8x128xf32>
      %cst_30 = arith.constant dense<0.000000e+00> : vector<8xf32>
      %59 = vector.multi_reduction <add>, %58, %cst_30 [1] : vector<8x128xf32> to vector<8xf32>
      %60 = vector.shape_cast %59 : vector<8xf32> to vector<8x1xf32>
      %61 = math.log %60 : vector<8x1xf32>
      %62 = arith.addf %53, %61 : vector<8x1xf32>
      %c0_31 = arith.constant 0 : index
      %c0_32 = arith.constant 0 : index
      %63 = vector.load %arg10[%c0_31, %c0_32] : memref<8x128xf32, #tpu.memory_space<vmem>>, vector<8x128xf32>
      %cst_33 = arith.constant dense<0.000000e+00> : vector<8xf32>
      %64 = vector.multi_reduction <add>, %63, %cst_33 [1] : vector<8x128xf32> to vector<8xf32>
      %65 = vector.shape_cast %64 : vector<8xf32> to vector<8x1xf32>
      %c0_34 = arith.constant 0 : index
      %c0_35 = arith.constant 0 : index
      %66 = vector.load %arg6[%c0_34, %c0_35] : memref<8x1xf32, #tpu.memory_space<vmem>>, vector<8x1xf32>
      %67 = arith.divf %65, %66 : vector<8x1xf32>
      %68 = arith.subf %67, %62 : vector<8x1xf32>
      %cst_36 = arith.constant -1.000000e+00 : f32
      %69 = vector.broadcast %cst_36 : f32 to vector<8x1xf32>
      %70 = arith.mulf %69, %68 : vector<8x1xf32>
      %c0_37 = arith.constant 0 : index
      %c0_38 = arith.constant 0 : index
      %71 = vector.load %arg7[%c0_37, %c0_38] : memref<8x1xf32, #tpu.memory_space<vmem>>, vector<8x1xf32>
      tpu.vector_store %arg7[%c0_37, %c0_38], %70 {strides = array<i32>} : memref<8x1xf32, #tpu.memory_space<vmem>>, vector<8x1xf32>,
    } else {
    }
    return
  }
  func.func @transform_0(%arg0: i32, %arg1: i32) -> (i32, i32) {
    %c0_i32 = arith.constant 0 : i32
    %c0_i32_0 = arith.constant 0 : i32
    return %arg0, %c0_i32 : i32, i32
  }
  func.func @transform_1(%arg0: i32, %arg1: i32) -> (i32, i32) {
    %c0_i32 = arith.constant 0 : i32
    %c0_i32_0 = arith.constant 0 : i32
    %c0_i32_1 = arith.constant 0 : i32
    return %c0_i32, %c0_i32_0 : i32, i32
  }
  func.func @transform_2(%arg0: i32, %arg1: i32) -> (i32, i32) {
    %c0_i32 = arith.constant 0 : i32
    %c0_i32_0 = arith.constant 0 : i32
    return %arg0, %c0_i32 : i32, i32
  }
  func.func @transform_3(%arg0: i32, %arg1: i32) -> (i32, i32) {
    %c0_i32 = arith.constant 0 : i32
    %c0_i32_0 = arith.constant 0 : i32
    %c0_i32_1 = arith.constant 0 : i32
    return %c0_i32, %c0_i32_0 : i32, i32
  }
  func.func @transform_4(%arg0: i32, %arg1: i32) -> (i32, i32) {
    %c0_i32 = arith.constant 0 : i32
    %c0_i32_0 = arith.constant 0 : i32
    return %arg0, %c0_i32 : i32, i32
  }
  func.func @transform_5(%arg0: i32, %arg1: i32) -> (i32, i32) {
    %c0_i32 = arith.constant 0 : i32
    %c0_i32_0 = arith.constant 0 : i32
    return %arg0, %c0_i32 : i32, i32
  }
}

</mosaic_0001>

<bundles_post_ra>
// kernel: tpu_custom_call.1
= control target key start
LH: loop header
LB: loop body
LE: loop exit
PB: predicated region body
PF: predicated region fallthrough
CT: control target
= control target key end

     0   :  { %10 = vsyncpa [#allocation6], 0  ;;  %s662_s18 = smov 0   ;;  %s664_s19 = smov 0   ;;  %s721_s0 = inlined_call_operand.vmem [shape: f32[16,128], index: 0, kind: input, shape index: {}]   ;;  %s722_s1 = inlined_call_operand.hbm [shape: f32[128,128], index: 1, kind: input, shape index: {}]   ;;  %s723_s2 = inlined_call_operand.vmem [shape: s32[16,1], index: 2, kind: input, shape index: {}]   ;;  %s724_s3 = inlined_call_operand.vmem [shape: s32[1,128], index: 3, kind: input, shape index: {}]   ;;  %s725_s4 = inlined_call_operand.vmem [shape: f32[16,1], index: 4, kind: input, shape index: {}]   ;;  %s726_s5 = inlined_call_operand.vmem [shape: f32[16,1], index: 5, kind: output, shape index: {}]  }
   0x1   :  { %s666_s20 = smov 0  }
   0x2 LB: > { %s506_s21 = sadd.s32 4294967295, %s626_s20   ;;  %s28_s22 = sadd.s32 1, %s622_s19  ;;  %s626_s20 = sphi %s666_s20, %s16_s20   ;;  %s622_s19 = sphi %s664_s19, %s728_s19   ;;  %s618_s18 = sphi %s662_s18, %s727_s18  }
   0x3   : > { %p30_p0 = scmp.ge.s32.totalorder %s28_s22, 2  ;;  %p508_p1 = scmp.ge.s32.totalorder %s626_s20, 1 }
   0x4   : > { %p179_p2 = scmp.lt.s32.totalorder %s626_s20, 3  ;;  %p528_p4 = scmp.eq.s32.totalorder %s506_s21, 0 }
   0x5   : > { %s730_s22 = smov (%p30_p0, %s28_s22), 0  ;;  %s190_s25 = sshll.u32 %s722_s1, 4  ;;  %s191_s25 = int_to_ptr.hbm [resolvable:$true] %s190_s25 }
   0x6   : > { %p180_p3 = pnand %p508_p1, %p179_p2  ;;  %s628_s26 = smov [#allocation5]  }
   0x7   : > { %s192_s27 = sshll.u32 %s628_s26, 4  ;;  %s629_s28 = smov 128   ;;  %s193_s27 = int_to_ptr.vmem [resolvable:$true] %s192_s27 }
   0x8   : > { %p524_p5 = pneg %p180_p3  ;;  %s630_s29 = smov 8  }
   0x9   : > { %232 = sbr.rel (%p180_p3) target bundleno = 469 (0x1d5), region = 40 }
   0xa   : > { %p525_p6 = pnand %p528_p4, %p524_p5 }
   0xc   : > { %527 = dma.hbm_to_vmem [thread:$0]  (!%p525_p6), %s191_s25, 2048, %s193_s27, [#allocation6], %s629_s28, %s629_s28, %s630_s29  }
   0xe   : > { %613 = dma.done.wait (%p528_p4), [#allocation6], 2048  }
   0xf   : > { %615 = vsyncadd (%p528_p4), [#allocation6], 4294965248  ;;  %v307_v0 = vld [vmem:[#allocation5 + $0x78] sm:$0xff]  ;;  %v306_v1 = vld [vmem:[#allocation5 + $0x70] sm:$0xff]  ;;  %p267_p7 = scmp.lt.s32.totalorder %s618_s18, 1  ;;  %v631_v17 = vmov 0   ;;  %v330_v18 = vlaneseq }
  0x10   : > { %309 = vmatpush.xpose.msra.mxu0 %v307_v0  ;;  %v305_v2 = vld [vmem:[#allocation5 + $0x68] sm:$0xff]  ;;  %v304_v3 = vld [vmem:[#allocation5 + $0x60] sm:$0xff]  ;;  %v303_v4 = vld [vmem:[#allocation5 + $0x58] sm:$0xff]  ;;  %558 = vset.pattern.permute.xlu0 %v631_v17  ;;  %s517_s10 = sshll.u32 %s618_s18, 3  ;;  %vm403_vm7 = vcmask 7168  }
  0x11   : > { %v302_v5 = vld [vmem:[#allocation5 + $0x50] sm:$0xff]  ;;  %v301_v6 = vld [vmem:[#allocation5 + $0x48] sm:$0xff]  ;;  %v300_v7 = vld [vmem:[#allocation5 + $0x40] sm:$0xff]  ;;  %s268_s30 = scalar_select %p267_p7, %s618_s18, 1  ;;  %v331_v19 = vshrl.u32 %v330_v18, 7  ;;  %v332_v20 = vstv %s517_s10  ;;  %v336_v22 = vand.u32 127, %v330_v18 }
  0x12   : > { %v299_v8 = vld [vmem:[#allocation5 + $0x38] sm:$0xff]  ;;  %v298_v9 = vld [vmem:[#allocation5 + $0x30] sm:$0xff]  ;;  %v297_v10 = vld [vmem:[#allocation5 + $0x28] sm:$0xff] }
  0x13   : > { %v296_v11 = vld [vmem:[#allocation5 + $0x20] sm:$0xff]  ;;  %v295_v12 = vld [vmem:[#allocation5 + $0x18] sm:$0xff]  ;;  %v294_v13 = vld [vmem:[#allocation5 + $0x10] sm:$0xff]  ;;  %s688_s6 = sshll.u32 %s268_s30, 3  ;;  %v333_v21 = vadd.s32 %v332_v20, %v331_v19 }
  0x14   : > { %310 = vmatpush.xpose.msra.mxu0 %v306_v1  ;;  %v293_v14 = vld [vmem:[#allocation5 + $0x8] sm:$0xff]  ;;  %v292_v15 = vld [vmem:[#allocation5] sm:$0xff]  ;;  %s270_s9 = scalar_lea.vmem %s721_s0, %s688_s6  ;;  %s274_s13 = scalar_lea.vmem %s723_s2, %s688_s6 }
  0x15   : > { %v308_v16 = vld [vmem:[%s270_s9] sm:$0xff]  ;;  %vm341_vm0 = vcmp.ne.s32.totalorder %v333_v21, %v336_v22  ;;  %s278_s18 = scalar_lea.vmem %s725_s4, %s688_s6  ;;  %s282_s24 = scalar_lea.vmem %s726_s5, %s688_s6 }
  0x16   : > { %v334_v26 = vld [vmem:[%s274_s13] sm:$0xff] }
  0x17   : > { %v559_v40 = vld [vmem:[%s724_s3] ss:$0 sm:$0xff] }
  0x18   : > { %311 = vmatpush.xpose.msra.mxu0 %v305_v2  ;;  %v385_v43 = vld [vmem:[%s278_s18] sm:$0xff] }
  0x19   : > { %vm391_vm3 = vweird.f32 %v385_v43  ;;  %v397_v48 = vand.u32 2147483648, %v385_v43  ;;  %v395_v51 = vand.u32 2147483647, %v385_v43 }
  0x1b   : > { %v398_v52 = vor.u32 1.1754944e-38, %v397_v48  ;;  %vm396_vm6 = vcmp.eq.f32.partialorder %v395_v51, 8.507059e+37 }
  0x1c   : > { %312 = vmatpush.xpose.msra.mxu0 %v304_v3 }
  0x20   : > { %313 = vmatpush.xpose.msra.mxu0 %v303_v4 }
  0x24   : > { %314 = vmatpush.xpose.msra.mxu0 %v302_v5 }
  0x28   : > { %315 = vmatpush.xpose.msra.mxu0 %v301_v6 }
  0x2c   : > { %316 = vmatpush.xpose.msra.mxu0 %v300_v7 }
  0x30   : > { %317 = vmatpush.xpose.msra.mxu0 %v299_v8 }
  0x34   : > { %318 = vmatpush.xpose.msra.mxu0 %v298_v9 }
  0x38   : > { %319 = vmatpush.xpose.msra.mxu0 %v297_v10 }
  0x3c   : > { %320 = vmatpush.xpose.msra.mxu0 %v296_v11 }
  0x40   : > { %321 = vmatpush.xpose.msra.mxu0 %v295_v12 }
  0x44   : > { %322 = vmatpush.xpose.msra.mxu0 %v294_v13 }
  0x48   : > { %323 = vmatpush.xpose.msra.mxu0 %v293_v14 }
  0x4c   : > { %324 = vmatpush.xpose.msra.mxu0 %v292_v15 }
  0x4f   : > { %325 = vmatmul.f32.vlgmr.msra.gmra.mxu0 %v308_v16 }
  0xcc   : > { %v326_v23 = vpop.f32.mrf.mxu0 }
  0xcd   : > { %v342_v24 = vsel %vm341_vm0, %v326_v23, -1e+30 }
  0xce   : > { %v350_v25 = vmax.f32 %v342_v24, -1e+30 }
  0xd0   : > { %370 = vmax.xlane.f32.xlu0 %v350_v25  ;;  %v352_v27 = vsub.f32 -1e+30, %v350_v25  ;;  %v356_v29 = vsub.f32 %v342_v24, %v350_v25 }
  0xd2   : > { %v353_v28 = vmul.f32 1.442695, %v352_v27  ;;  %v357_v30 = vmul.f32 1.442695, %v356_v29 }
  0xd4   : > { %560 = vpow2.f32 %v353_v28 }
  0xd5   : > { %562 = vpow2.f32 %v357_v30 }
  0xda   : > { %v561_v33 = vpop.eup %560 }
  0xdb   : > { %v355_v35 = vmul.f32 0.0, %v561_v33  ;;  %v563_v36 = vpop.eup %562 }
  0xdd   : > { %v359_v37 = vadd.f32 %v563_v36, %v355_v35 }
  0xe4   : > { %344 = vperm.xlu0 %558, %v334_v26  }
 0x143   : > { %v371_v31 = vpop.xlane.xlu0 %370 }
 0x144   : > { %v373_v32 = vsub.f32 %v350_v25, %v371_v31 }
 0x146   : > { %v374_v34 = vmul.f32 1.442695, %v373_v32 }
 0x148   : > { %564 = vpow2.f32 %v374_v34 }
 0x149   : > { %566 = vrcp.f32 %v385_v43 }
 0x14e   : > { %v565_v38 = vpop.eup %564 }
 0x14f   : > { %v376_v39 = vmul.f32 %v565_v38, %v359_v37  ;;  %v567_v44 = vpop.eup %566 }
 0x150   : > { %v387_v45 = vmul.f32 %v567_v44, %v385_v43  ;;  %vm392_vm4 = vweird.f32 %v567_v44 }
 0x151   : > { %377 = vadd.xlane.f32.xlu1 %v376_v39  ;;  %vm393_vm5 = vmor %vm391_vm3, %vm392_vm4 }
 0x152   : > { %v388_v46 = vsub.f32 1.0, %v387_v45 }
 0x154   : > { %v389_v47 = vmul.f32 %v567_v44, %v388_v46 }
 0x156   : > { %v345_v41 = vpop.permute.xlu0 %344  ;;  %v390_v50 = vadd.f32 %v567_v44, %v389_v47 }
 0x157   : > { %vm347_vm1 = vcmp.eq.s32.totalorder %v345_v41, %v559_v40 }
 0x158   : > { %vm348_vm2 = vmand %vm347_vm1, %vm341_vm0  ;;  %v394_v53 = vsel %vm393_vm5, %v567_v44, %v390_v50 }
 0x159   : > { %v363_v42 = vsel %vm348_vm2, %v342_v24, 0.0  ;;  %v399_v55 = vsel %vm396_vm6, %v398_v52, %v394_v53 }
 0x15a   : > { %383 = vadd.xlane.f32.xlu1 %v363_v42 }
 0x1c4   : > { %v378_v49 = vpop.xlane.xlu1 %377 }
 0x1c5   : > { %568 = vlog2.f32 %v378_v49 }
 0x1cb   : > { %v569_v54 = vpop.eup %568 }
 0x1cc   : > { %v380_v56 = vmul.f32 0.6931472, %v569_v54 }
 0x1cd   : > { %v384_v57 = vpop.xlane.xlu1 %383 }
 0x1ce   : > { %v381_v58 = vadd.f32 %v380_v56, %v371_v31  ;;  %v400_v59 = vmul.f32 %v399_v55, %v384_v57 }
 0x1d0   : > { %v401_v60 = vsub.f32 %v400_v59, %v381_v58 }
 0x1d2   : > { %v402_v61 = vmul.f32 -1.0, %v401_v60 }
 0x1d4   : > { %404 = vst.msk [vmem:[%s282_s24] sm:$0xff] %vm403_vm7, %v402_v61 }
 0x1d5 PF: > { %s16_s20 = sadd.s32 1, %s626_s20   ;;  %s727_s18 = smov %s622_s19 }
 0x1d6   : > { %p13_p8 = scmp.ge.s32.totalorder %s16_s20, 4   ;;  %s728_s19 = smov %s730_s22 }
 0x1d8   :  { %15 = sbr.rel (!%p13_p8) target bundleno = 2 (0x2), region = 91 }
 0x1dd   :  { %424 = vsyncpa [#allocation6], 1 }
 0x1de   :  { %426 = vsyncpa [#allocation6 + $0x1], 1 }

</bundles_post_ra>
